<compile_context>
chip_gen: v7x
topology: tpu7x:2x2x1
jax: 0.10.0
libtpu: 0.0.40
codegen_flags: <defaults>
</compile_context>

<pallas_src>
import jax
import jax.numpy as jnp
from jax.experimental import pallas as pl
from jax.experimental.pallas import tpu as pltpu

LANES = 128
OUT_SUBLANES = 8


def _matching_mean_kernel(w_ref, d1_ref, d2_ref, out_ref):
    """One grid step: weighted sum of squared differences for one row tile."""
    t = pl.program_id(0)
    diff = d1_ref[...].astype(jnp.float32) - d2_ref[...].astype(jnp.float32)
    sq = diff * diff
    # Reduce only over the leading axis: pure VPU vector adds, no cross-lane
    # XLU reduce and no vector->SMEM scalar round-trip in the hot loop.
    partial = jnp.sum(sq.reshape(-1, OUT_SUBLANES, LANES), axis=0)     # (8, 128)
    # w already holds lambdas[item] / numel[item] for this tile's item.
    out_ref[...] = w_ref[t] * partial


def _round_up(v, m):
    return ((v + m - 1) // m) * m


def matching_mean_loss(domain_1, domain_2, lambdas, *, rows_per_tile=2048):
    """sum_i lambdas[i] * MSE(domain_1[i], domain_2[i]) as a Pallas TPU kernel.

    domain_1 / domain_2: sequences of arrays (pairwise identical shapes).
    lambdas: length-K weights (the module's non-trainable parameter).
    """
    domain_1, domain_2 = list(domain_1), list(domain_2)
    K = len(domain_1)
    assert len(domain_2) == K
    if K == 0:
        return jnp.float32(0.0)
    lambdas = jnp.asarray(lambdas, jnp.float32)
    assert lambdas.shape[0] == K

    # Common *native* storage dtype (no forced f32 upcast of the HBM stream).
    dt = domain_1[0].dtype
    for x in domain_1 + domain_2:
        dt = jnp.promote_types(dt, x.dtype)
    if (not jnp.issubdtype(dt, jnp.floating)) or jnp.dtype(dt).itemsize > 4:
        dt = jnp.float32
    itemsize = jnp.dtype(dt).itemsize
    sublanes = max(8, 32 // itemsize)        # (8,128) f32 / (16,128) bf16 tiling

    # Tile sizing: as large as useful, clamped to the biggest item and to a
    # VMEM budget (2 inputs x 2 pipeline buffers) safe on v5e / v6e / v7x.
    max_item_rows = max((int(x.size) + LANES - 1) // LANES for x in domain_1)
    rows_per_tile = _round_up(max(int(rows_per_tile), sublanes), sublanes)
    rows_per_tile = min(rows_per_tile, _round_up(max_item_rows, sublanes))
    vmem_cap_rows = (40 * 1024 * 1024) // (4 * LANES * itemsize)
    rows_per_tile = min(rows_per_tile,
                        max(sublanes, (vmem_cap_rows // sublanes) * sublanes))
    tile_elems = rows_per_tile * LANES

    # Ragged pack: each item padded only to its own tile boundary, then concat.
    def pack_item(x):
        flat = jnp.ravel(x).astype(dt)
        padded = _round_up(flat.shape[0], tile_elems)
        flat = jnp.pad(flat, (0, padded - flat.shape[0]))
        return flat.reshape(-1, LANES)

    d1 = jnp.concatenate([pack_item(x) for x in domain_1], axis=0)
    d2 = jnp.concatenate([pack_item(x) for x in domain_2], axis=0)

    # One SMEM weight per tile: lambdas[i] / numel_i (folds MSE's mean denom).
    tiles_per_item = []
    w_chunks = []
    for i in range(K):
        numel = int(domain_1[i].size)
        assert int(domain_2[i].size) == numel, "pairwise shapes must match"
        assert numel > 0
        n_tiles_i = _round_up(numel, tile_elems) // tile_elems
        tiles_per_item.append(n_tiles_i)
        w_chunks.append(jnp.broadcast_to(lambdas[i] / jnp.float32(numel),
                                         (n_tiles_i,)))
    w = jnp.concatenate(w_chunks).astype(jnp.float32)
    num_tiles = int(sum(tiles_per_item))

    tile_bytes = rows_per_tile * LANES * itemsize
    vmem_limit_bytes = int(min(max(2 * 4 * tile_bytes, 16 * 1024 * 1024),
                               48 * 1024 * 1024))

    partials = pl.pallas_call(
        _matching_mean_kernel,
        out_shape=jax.ShapeDtypeStruct((num_tiles * OUT_SUBLANES, LANES),
                                       jnp.float32),
        grid_spec=pltpu.PrefetchScalarGridSpec(
            num_scalar_prefetch=1,                       # per-tile weights -> SMEM
            grid=(num_tiles,),
            in_specs=[
                pl.BlockSpec((rows_per_tile, LANES), lambda t, w_sm: (t, 0)),
                pl.BlockSpec((rows_per_tile, LANES), lambda t, w_sm: (t, 0)),
            ],
            out_specs=pl.BlockSpec((OUT_SUBLANES, LANES),
                                   lambda t, w_sm: (t, 0)),
        ),
        compiler_params=pltpu.CompilerParams(
            dimension_semantics=("parallel",),   # independent tiles: megacore-safe
            vmem_limit_bytes=vmem_limit_bytes),
    )(w, d1, d2)

    # Tiny finalize reduce (num_tiles * 8 * 128 f32 values) outside the kernel.
    return jnp.sum(partials)


def _reference(domain_1, domain_2, lambdas):
    """Pure-JAX mirror of the PyTorch forward (distance == MSELoss)."""
    lambdas = jnp.asarray(lambdas, jnp.float32)
    tot = jnp.float32(0.0)
    for i in range(len(domain_1)):
        d = domain_1[i].astype(jnp.float32) - domain_2[i].astype(jnp.float32)
        tot = tot + lambdas[i] * jnp.mean(d * d)
    return tot


if __name__ == "__main__":
    key = jax.random.PRNGKey(0)
    lambdas = jnp.asarray([0.5, 1.0, 0.25], jnp.float32)
    # Last shape is deliberately not a multiple of 128 lanes so the
    # zero-padding path is exercised.
    shapes = [(2, 4, 16, 16), (2, 4, 16, 16), (2, 4, 8, 15)]
    keys = jax.random.split(key, 2 * len(shapes))
    domain_1 = [jax.random.normal(keys[2 * i], s, dtype=jnp.float32)
                for i, s in enumerate(shapes)]
    domain_2 = [jax.random.normal(keys[2 * i + 1], s, dtype=jnp.float32)
                for i, s in enumerate(shapes)]

    # Small rows_per_tile here so the multi-tile-per-item path (grid=(5,)) is
    # actually exercised at these tiny demo shapes; production default is 2048.
    out = matching_mean_loss(domain_1, domain_2, lambdas, rows_per_tile=8)
    out = jax.block_until_ready(out)
    ref = jax.block_until_ready(_reference(domain_1, domain_2, lambdas))
    assert jnp.allclose(out, ref, rtol=1e-5, atol=1e-5), (out, ref)

    # Native-dtype streaming: bf16 inputs stay bf16 in HBM (half the bytes);
    # the math is still f32 inside the kernel.
    d1_bf = [x.astype(jnp.bfloat16) for x in domain_1]
    d2_bf = [x.astype(jnp.bfloat16) for x in domain_2]
    out_bf = jax.block_until_ready(matching_mean_loss(d1_bf, d2_bf, lambdas))
    ref_bf = jax.block_until_ready(_reference(d1_bf, d2_bf, lambdas))
    assert jnp.allclose(out_bf, ref_bf, rtol=1e-5, atol=1e-5), (out_bf, ref_bf)

    print("KERNEL_OK")
</pallas_src>

<mosaic_0001>
module attributes {stable_mosaic.version = 11 : i64} {
  func.func @_matching_mean_kernel(%arg0: i32, %arg1: memref<5xf32, #tpu.memory_space<smem>>, %arg2: memref<8x128xf32, #tpu.memory_space<vmem>>, %arg3: memref<8x128xf32, #tpu.memory_space<vmem>>, %arg4: memref<8x128xf32, #tpu.memory_space<vmem>>) attributes {dimension_semantics = [#tpu.dimension_semantics<parallel>], iteration_bounds = array<i64: 5>, scalar_prefetch = 1 : i64, scratch_operands = 0 : i64, tpu.core_type = #tpu.core_type<tc>, window_params = [{transform_indices = @transform_0, window_bounds = array<i64: 8, 128>}, {transform_indices = @transform_1, window_bounds = array<i64: 8, 128>}, {transform_indices = @transform_2, window_bounds = array<i64: 8, 128>}]} {
    %c0 = arith.constant 0 : index
    %c0_0 = arith.constant 0 : index
    %0 = vector.load %arg2[%c0, %c0_0] : memref<8x128xf32, #tpu.memory_space<vmem>>, vector<8x128xf32>
    %c0_1 = arith.constant 0 : index
    %c0_2 = arith.constant 0 : index
    %1 = vector.load %arg3[%c0_1, %c0_2] : memref<8x128xf32, #tpu.memory_space<vmem>>, vector<8x128xf32>
    %2 = arith.subf %0, %1 : vector<8x128xf32>
    %3 = arith.mulf %2, %2 : vector<8x128xf32>
    %4 = vector.shape_cast %3 : vector<8x128xf32> to vector<1x8x128xf32>
    %cst = arith.constant dense<0.000000e+00> : vector<8x128xf32>
    %5 = vector.multi_reduction <add>, %4, %cst [0] : vector<1x8x128xf32> to vector<8x128xf32>
    %6 = arith.index_cast %arg0 : i32 to index
    %7 = memref.load %arg1[%6] : memref<5xf32, #tpu.memory_space<smem>>
    %8 = vector.broadcast %7 : f32 to vector<8x128xf32>
    %9 = arith.mulf %8, %5 : vector<8x128xf32>
    %c0_3 = arith.constant 0 : index
    %c0_4 = arith.constant 0 : index
    %10 = vector.load %arg4[%c0_3, %c0_4] : memref<8x128xf32, #tpu.memory_space<vmem>>, vector<8x128xf32>
    tpu.vector_store %arg4[%c0_3, %c0_4], %9 {strides = array<i32>} : memref<8x128xf32, #tpu.memory_space<vmem>>, vector<8x128xf32>,
    return
  }
  func.func @transform_0(%arg0: i32, %arg1: memref<5xf32, #tpu.memory_space<smem>>) -> (i32, i32) {
    %c0_i32 = arith.constant 0 : i32
    %c0_i32_0 = arith.constant 0 : i32
    return %arg0, %c0_i32 : i32, i32
  }
  func.func @transform_1(%arg0: i32, %arg1: memref<5xf32, #tpu.memory_space<smem>>) -> (i32, i32) {
    %c0_i32 = arith.constant 0 : i32
    %c0_i32_0 = arith.constant 0 : i32
    return %arg0, %c0_i32 : i32, i32
  }
  func.func @transform_2(%arg0: i32, %arg1: memref<5xf32, #tpu.memory_space<smem>>) -> (i32, i32) {
    %c0_i32 = arith.constant 0 : i32
    %c0_i32_0 = arith.constant 0 : i32
    return %arg0, %c0_i32 : i32, i32
  }
}

</mosaic_0001>

<bundles_post_ra>
// kernel: tpu_custom_call.1
= control target key start
LH: loop header
LB: loop body
LE: loop exit
PB: predicated region body
PF: predicated region fallthrough
CT: control target
= control target key end

     0   :  { %s772_s0 = inlined_call_operand.hbm [shape: f32[5], index: 0, kind: input, shape index: {}]   ;;  %s773_s1 = inlined_call_operand.hbm [shape: f32[40,128], index: 1, kind: input, shape index: {}]   ;;  %s774_s2 = inlined_call_operand.hbm [shape: f32[40,128], index: 2, kind: input, shape index: {}]   ;;  %s775_s3 = inlined_call_operand.hbm [shape: f32[40,128], index: 3, kind: output, shape index: {}]  }
   0x1   :  { %s384_s14 = scalar_lea.hbm %s772_s0, 16 }
   0x2   :  { %p385_p0 = scmp.ne.s32.totalorder %s772_s0, %s384_s14  ;;  %p388_p1 = scmp.lt.u32.totalorder %s384_s14, %s772_s0 }
   0x4   :  { %p390_p2 = pnand %p388_p1, %p385_p0 }
   0x6   :  { %393 = shalt.err (!%p390_p2)  }
   0x7   :  { %s528_s19 = smov [#allocation3]  }
   0x8   :  { %9 = dma.hbm_to_smem %s772_s0, 16, %s528_s19, [#allocation2] }
   0x9   :  { %498 = dma.done.wait [#allocation2], 16 }
   0xa   :  { %499 = vsyncadd [#allocation2], 4294967280 }
   0xb   :  { %11 = sfence }
   0xc   :  { %12 = vsyncpa [#allocation5], 0 }
   0xd   :  { %14 = vsyncpa [#allocation5 + $0x1], 0 }
   0xe   :  { %15 = vsyncpa [#allocation8], 0 }
   0xf   :  { %17 = vsyncpa [#allocation8 + $0x1], 0 }
  0x10   :  { %18 = vsyncpa [#allocation6], 0 }
  0x11   :  { %20 = vsyncpa [#allocation6 + $0x1], 0  ;;  %s564_s22 = smov 0   ;;  %s566_s23 = smov 0  }
  0x12   :  { %s568_s24 = smov 0   ;;  %s570_s25 = smov 0  }
  0x13 LB: > { %s585_s0 = sadd.s32 4294967295, %s526_s25   ;;  %s317_s26 = sadd.s32 4294967294, %s526_s25   ;;  %s526_s25 = sphi %s570_s25, %s793_s25   ;;  %s522_s24 = sphi %s568_s24, %s792_s24   ;;  %s518_s23 = sphi %s566_s23, %s791_s23   ;;  %s514_s22 = sphi %s564_s22, %s790_s22  }
  0x14   : > { %s589_s27 = sadd.s32 1, %s526_s25   ;;  %s33_s28 = sadd.s32 1, %s522_s24 }
  0x15   : > { %s30_s29 = ssub.s32 %s526_s25, %s589_s27  ;;  %p40_p3 = scmp.ne.s32.totalorder %s522_s24, %s518_s23 }
  0x16   : > { %p31_p4 = scmp.eq.s32.totalorder %s30_s29, 0  ;;  %p41_p5 = scmp.eq.s32.totalorder %s526_s25, 0 }
  0x17   : > { %p46_p6 = scmp.ne.s32.totalorder %s518_s23, %s514_s22  ;;  %p47_p7 = scmp.eq.s32.totalorder %s585_s0, 0 }
  0x18   : > { %s601_s30 = scalar_select %p31_p4, %s522_s24, %s33_s28  }
  0x19   : > { %p603_p8 = por %p41_p5, %p40_p3  ;;  %p607_p9 = por %p47_p7, %p46_p6 }
  0x1a   : > { %p96_p10 = scmp.eq.s32.totalorder %s585_s0, 4  ;;  %p102_p11 = scmp.eq.s32.totalorder %s317_s26, 4 }
  0x1b   : > { %s779_s5 = scalar_select %p607_p9, 1, 0 }
  0x1c   : > { %p349_p12 = scmp.lt.s32.totalorder %s526_s25, 5  ;;  %p613_p13 = por %p96_p10, %p40_p3 }
  0x1d   : > { %p617_p0 = por %p102_p11, %p46_p6  ;;  %s622_s8 = sand.u32 1, %s522_s24  }
  0x1e   : > { %s780_s6 = scalar_select %p613_p13, 1, 0 }
  0x1f   : > { %s781_s7 = scalar_select %p617_p0, 1, 0 }
  0x20   : > { %s321_s9 = sshll.u32 %s526_s25, 7  ;;  %s320_s10 = sshll.u32 %s622_s8, 3 }
  0x21   : > { %s631_s13 = scalar_lea.hbm %s773_s1, %s321_s9  ;;  %s126_s14 = scalar_lea.vmem [#allocation4], %s320_s10 }
  0x22   : > { %s133_s15 = sshll.u32 %s126_s14, 4  ;;  %p637_p1 = pnand %p349_p12, %p603_p8  ;;  %s641_s15 = int_to_ptr.vmem [resolvable:$true] %s133_s15 }
  0x23   : > { %s123_s17 = scalar_lea.sflag [#allocation5], %s622_s8  ;;  %s394_s18 = scalar_lea.hbm %s631_s13, 128 }
  0x24   : > { %p395_p4 = scmp.ne.s32.totalorder %s631_s13, %s394_s18  ;;  %p396_p5 = pneg %p637_p1 }
  0x25   : > { %s399_s21 = scalar_lea.hbm %s773_s1, 640  ;;  %p400_p8 = scmp.lt.u32.totalorder %s631_s13, %s773_s1 }
  0x26   : > { %p397_p6 = pnand %p396_p5, %p395_p4  ;;  %p401_p10 = scmp.lt.u32.totalorder %s399_s21, %s394_s18 }
  0x27   : > { %p403_p12 = scmp.lt.u32.totalorder %s394_s18, %s631_s13 }
  0x28   : > { %p398_p7 = pneg %p397_p6  ;;  %p402_p11 = por %p401_p10, %p400_p8 }
  0x2a   : > { %p404_p2 = por %p403_p12, %p402_p11 }
  0x2c   : > { %p405_p3 = pnand %p404_p2, %p398_p7 }
  0x2e   : > { %408 = shalt.err (!%p405_p3)
}
  0x2f   : > { %s409_s29 = scalar_lea.vmem %s641_s15, 128  ;;  %s529_s4 = smov [#allocation4]  }
  0x30   : > { %p410_p4 = scmp.ne.s32.totalorder %s641_s15, %s409_s29  ;;  %s414_s11 = sshll.u32 %s529_s4, 4  ;;  %s415_s11 = int_to_ptr.vmem [resolvable:$false] %s414_s11 }
  0x31   : > { %s416_s12 = scalar_lea.vmem %s415_s11, 256  ;;  %p417_p13 = scmp.lt.s32.totalorder %s641_s15, %s415_s11 }
  0x32   : > { %p412_p6 = pnand %p410_p4, %p396_p5  ;;  %p418_p8 = scmp.lt.s32.totalorder %s416_s12, %s409_s29 }
  0x34   : > { %p413_p0 = pneg %p412_p6  ;;  %p419_p10 = por %p418_p8, %p417_p13 }
  0x36   : > { %p420_p11 = pnand %p419_p10, %p413_p0 }
  0x38   : > { %423 = shalt.err (!%p420_p11)
}
  0x39   : > { %341 = dma.hbm_to_vmem [thread:$0]  (!%p637_p1), %s631_s13, 128, %s641_s15, %s123_s17  }
  0x3a   : > { %p783_p2 = scmp.lt.s32.totalorder %s526_s25, 6  ;;  %p784_p3 = scmp.ge.s32.totalorder %s526_s25, 1 }
  0x3b   : > { %s684_s20 = scalar_lea.hbm %s774_s2, %s321_s9  ;;  %s144_s21 = scalar_lea.vmem [#allocation7], %s320_s10 }
  0x3c   : > { %p675_p7 = pnand %p784_p3, %p783_p2  ;;  %s151_s26 = sshll.u32 %s144_s21, 4  ;;  %s152_s26 = int_to_ptr.vmem [resolvable:$true] %s151_s26 }
  0x3d   : > { %s141_s13 = scalar_lea.sflag [#allocation8], %s622_s8  ;;  %s424_s15 = scalar_lea.hbm %s684_s20, 128 }
  0x3e   : > { %s785_s14 = scalar_select %p675_p7, 1, 0 }
  0x3f   : > { %p425_p13 = scmp.ne.s32.totalorder %s684_s20, %s424_s15  ;;  %s429_s9 = scalar_lea.hbm %s774_s2, 640 }
  0x40   : > { %p430_p4 = scmp.lt.u32.totalorder %s684_s20, %s774_s2  ;;  %p431_p6 = scmp.lt.u32.totalorder %s429_s9, %s424_s15 }
  0x41   : > { %p427_p0 = pnand %p425_p13, %p396_p5  ;;  %p433_p10 = scmp.lt.u32.totalorder %s424_s15, %s684_s20 }
  0x42   : > { %p432_p8 = por %p431_p6, %p430_p4 }
  0x43   : > { %p428_p12 = pneg %p427_p0 }
  0x44   : > { %p434_p11 = por %p433_p10, %p432_p8 }
  0x46   : > { %p435_p2 = pnand %p434_p11, %p428_p12 }
  0x48   : > { %438 = shalt.err (!%p435_p2)
}
  0x49   : > { %s439_s8 = scalar_lea.vmem %s152_s26, 128  ;;  %s530_s10 = smov [#allocation7]  }
  0x4a   : > { %p440_p3 = scmp.ne.s32.totalorder %s152_s26, %s439_s8  ;;  %s444_s11 = sshll.u32 %s530_s10, 4  ;;  %s445_s11 = int_to_ptr.vmem [resolvable:$false] %s444_s11 }
  0x4b   : > { %s446_s12 = scalar_lea.vmem %s445_s11, 256  ;;  %p447_p9 = scmp.lt.s32.totalorder %s152_s26, %s445_s11 }
  0x4c   : > { %p442_p13 = pnand %p440_p3, %p396_p5  ;;  %p448_p7 = scmp.lt.s32.totalorder %s446_s12, %s439_s8 }
  0x4e   : > { %p443_p0 = pneg %p442_p13  ;;  %p449_p4 = por %p448_p7, %p447_p9 }
  0x50   : > { %p450_p6 = pnand %p449_p4, %p443_p0 }
  0x52   : > { %453 = shalt.err (!%p450_p6)
}
  0x53   : > { %344 = dma.hbm_to_vmem [thread:$0]  (!%p637_p1), %s684_s20, 128, %s152_s26, %s141_s13  }
  0x54   : > { %p786_p12 = scmp.ne.s32.totalorder %s785_s14, 0 }
  0x55   : > { %s711_s18 = sand.u32 (!%p786_p12), 1, %s518_s23   ;;  %p787_p5 = scmp.ne.s32.totalorder (!%p786_p12), %s779_s5, 0 }
  0x56   : > { %160 = sbr.rel (%p786_p12) target bundleno = 122 (0x7a), region = 28  ;;  %s325_s19 = sshll.u32 (!%p786_p12), %s711_s18, 3 }
  0x57   : > { %s163_s21 = scalar_lea.sflag (!%p786_p12), [#allocation5], %s711_s18  ;;  %s166_s15 = scalar_lea.vmem (!%p786_p12), [#allocation4], %s325_s19 }
  0x5d   : > { %501 = dma.done.wait (%p787_p5), %s163_s21, 128  }
  0x5e   : > { %503 = vsyncadd (%p787_p5), %s163_s21, 4294967168  ;;  %s172_s16 = scalar_lea.sflag [#allocation8], %s711_s18  ;;  %s175_s20 = scalar_lea.vmem [#allocation7], %s325_s19 }
  0x5f   : > { %505 = dma.done.wait (%p787_p5), %s172_s16, 128  }
  0x60   : > { %507 = vsyncadd (%p787_p5), %s172_s16, 4294967168  ;;  %s206_s14 = sld [smem:[#allocation3 + %s585_s0]]  ;;  %v201_v0 = vld [vmem:[%s166_s15] sm:$0xff]  ;;  %v202_v1 = vld [vmem:[%s175_s20] sm:$0xff]  ;;  %s200_s26 = scalar_lea.vmem [#allocation9], %s325_s19 }
  0x61   : > { %v203_v2 = vsub.f32 %v201_v0, %v202_v1  ;;  %s224_s13 = sshll.u32 %s200_s26, 4  ;;  %s329_s17 = sshll.u32 %s585_s0, 7  ;;  %s726_s13 = int_to_ptr.vmem [resolvable:$true] %s224_s13 }
  0x62   : > { %s731_s5 = scalar_lea.hbm %s775_s3, %s329_s17  ;;  %s211_s29 = scalar_lea.sflag [#allocation6], %s711_s18 }
  0x63   : > { %v204_v4 = vmul.f32 %v203_v2, %v203_v2  ;;  %s454_s4 = scalar_lea.vmem %s726_s13, 128  ;;  %p788_p1 = scmp.ne.s32.totalorder %s780_s6, 0 }
  0x64   : > { %p455_p9 = scmp.ne.s32.totalorder %s726_s13, %s454_s4  ;;  %s531_s0 = smov [#allocation9]  }
  0x65   : > { %s458_s8 = sshll.u32 %s531_s0, 4  ;;  %s459_s8 = int_to_ptr.vmem [resolvable:$false] %s458_s8 }
  0x66   : > { %v207_v3 = vstv %s206_s14  ;;  %p456_p7 = pnand %p455_p9, %p788_p1  ;;  %s460_s10 = scalar_lea.vmem %s459_s8, 256 }
  0x67   : > { %v208_v5 = vmul.f32 %v207_v3, %v204_v4  ;;  %p461_p10 = scmp.lt.s32.totalorder %s726_s13, %s459_s8  ;;  %p462_p11 = scmp.lt.s32.totalorder %s460_s10, %s454_s4 }
  0x68   : > { %p457_p8 = pneg %p456_p7 }
  0x69   : > { %209 = vst [vmem:[%s200_s26] sm:$0xff] %v208_v5  ;;  %p463_p2 = por %p462_p11, %p461_p10 }
  0x6b   : > { %p464_p3 = pnand %p463_p2, %p457_p8 }
  0x6d   : > { %467 = shalt.err (!%p464_p3)
}
  0x6e   : > { %s468_s11 = scalar_lea.hbm %s731_s5, 128  ;;  %s472_s19 = scalar_lea.hbm %s775_s3, 640 }
  0x6f   : > { %p469_p13 = scmp.ne.s32.totalorder %s731_s5, %s468_s11  ;;  %p473_p6 = scmp.lt.u32.totalorder %s731_s5, %s775_s3 }
  0x70   : > { %p474_p12 = scmp.lt.u32.totalorder %s472_s19, %s468_s11  ;;  %p476_p9 = scmp.lt.u32.totalorder %s468_s11, %s731_s5 }
  0x71   : > { %p470_p0 = pnand %p469_p13, %p788_p1 }
  0x72   : > { %p475_p5 = por %p474_p12, %p473_p6 }
  0x73   : > { %p471_p4 = pneg %p470_p0 }
  0x74   : > { %p477_p7 = por %p476_p9, %p475_p5 }
  0x76   : > { %p478_p8 = pnand %p477_p7, %p471_p4 }
  0x78   : > { %481 = shalt.err (!%p478_p8)
}
  0x79   : > { %336 = dma.vmem_to_hbm [thread:$0]  (%p788_p1), %s726_s13, 128, %s731_s5, %s211_s29  }
  0x7a PF: > { %p350_p10 = scmp.ge.s32.totalorder %s526_s25, 2  ;;  %s236_s16 = sand.u32 1, %s514_s22  }
  0x7b   : > { %p789_p11 = scmp.ne.s32.totalorder %s781_s7, 0  ;;  %s237_s20 = scalar_lea.sflag [#allocation6], %s236_s16 }
  0x7d   : > { %p346_p2 = pnand %p350_p10, %p789_p11 }
  0x7f   : > { %509 = dma.done.wait (!%p346_p2), %s237_s20, 128  }
  0x80   : > { %511 = vsyncadd (!%p346_p2), %s237_s20, 4294967168  ;;  %p23_p3 = scmp.ge.s32.totalorder %s589_s27, 7   ;;  %s790_s22 = smov %s518_s23 }
  0x81   : > { %s791_s23 = smov %s522_s24  ;;  %s792_s24 = smov %s601_s30 }
  0x82   : > { %s793_s25 = smov %s589_s27  ;;  %25 = sbr.rel (!%p23_p3) target bundleno = 19 (0x13), region = 86 }
  0x89   :  { %242 = vsyncpa [#allocation5], 1 }
  0x8a   :  { %244 = vsyncpa [#allocation5 + $0x1], 1 }
  0x8b   :  { %245 = vsyncpa [#allocation8], 1 }
  0x8c   :  { %247 = vsyncpa [#allocation8 + $0x1], 1 }
  0x8d   :  { %248 = vsyncpa [#allocation6], 1 }
  0x8e   :  { %250 = vsyncpa [#allocation6 + $0x1], 1 }

</bundles_post_ra>
